<compile_context>
chip_gen: v7x
topology: tpu7x:2x2x1
jax: 0.10.0
libtpu: 0.0.40
codegen_flags: <defaults>
</compile_context>

<pallas_src>
import jax
import jax.numpy as jnp
from jax import lax
from jax.experimental import pallas as pl
from jax.experimental.pallas import tpu as pltpu

NEG_SLOPE = 0.2


def _leaky_relu(x):
    # Identical to where(x > 0, x, 0.2 * x) for slope < 1, one fewer VPU pass.
    return jnp.maximum(x, NEG_SLOPE * x)


def _make_mlp_kernel(chunk):
    def mlp_kernel(x_ref, w1_ref, b1_ref, w2_ref, b2_ref, w3_ref, b3_ref, o_ref):
        # x_ref : (in_dim, block_m)            feature-major batch tile
        # w1_ref: (dim, in_dim)   b1_ref: (dim, chunk)      (bias pre-broadcast)
        # w2_ref: (dim, dim)      b2_ref: (dim, chunk)
        # w3_ref: (out_dim, dim)  b3_ref: (out_dim, chunk)
        # o_ref : (out_dim, block_m)           lane-dense output tile
        block_m = x_ref.shape[-1]
        n_chunks = block_m // chunk            # static (block_m % chunk == 0)

        # Weights are tiny (1 vreg each) — hoist out of the column loop.
        w1 = w1_ref[...]
        w2 = w2_ref[...]
        w3 = w3_ref[...]

        def compute_chunk(start):
            xc = x_ref[:, pl.ds(start, chunk)]                    # (in_dim, chunk)
            # Layer 1: K=2 matmul on the (otherwise idle) MXU. HIGHEST keeps it
            # f32-exact; at K=2 the extra decomposition passes are negligible.
            h = jnp.dot(w1, xc, preferred_element_type=jnp.float32,
                        precision=lax.Precision.HIGHEST) + b1_ref[...]
            h = _leaky_relu(h)
            # Layer 2: (dim, dim) @ (dim, chunk) on the MXU.
            h = jnp.dot(w2, h, preferred_element_type=jnp.float32) + b2_ref[...]
            h = _leaky_relu(h)
            # Layer 3: (out_dim, dim) @ (dim, chunk) — output stays lane-dense.
            o = jnp.dot(w3, h, preferred_element_type=jnp.float32) + b3_ref[...]
            o_ref[:, pl.ds(start, chunk)] = o.astype(o_ref.dtype)

        if n_chunks == 1:
            compute_chunk(0)
        else:
            def body(c, carry):
                compute_chunk(pl.multiple_of(c * chunk, chunk))
                return carry
            lax.fori_loop(0, n_chunks, body, 0, unroll=2)

    return mlp_kernel


def _pick_block_m(B):
    # Big tiles amortize the ~0.35 us/grid-step overhead. With the chunked
    # inner loop, live intermediates are O(dim * chunk) regardless of block_m,
    # so VMEM/step is just the double-buffered I/O tiles (input (2, block_m)
    # and output (1, block_m), both padded to 8 sublanes => ~48 B/row * 2
    # buffers ~= 4.5 MiB at block_m=32768), comfortably under v7x's 32 MiB
    # scoped default. Keep >= 2 grid steps when B allows so both v7x
    # TensorCores get work.
    if B <= 128:
        return 128
    if B <= 1024:
        return int(128 * pl.cdiv(pl.cdiv(B, 2), 128))
    return int(min(32768, 512 * pl.cdiv(pl.cdiv(B, 2), 512)))


def mlp_forward(x, params, *, block_m=None):
    """x: (B, in_dim) f32.  params: PyTorch-layout weights (out_f, in_f), biases (out_f, 1)."""
    B, in_dim = x.shape
    w1, b1 = params["w1"], params["b1"]   # (dim, in_dim),  (dim, 1)
    w2, b2 = params["w2"], params["b2"]   # (dim, dim),     (dim, 1)
    w3, b3 = params["w3"], params["b3"]   # (out_dim, dim), (out_dim, 1)
    dim = w1.shape[0]
    out_dim = w3.shape[0]

    if block_m is None:
        block_m = _pick_block_m(B)
    chunk = min(512, block_m)
    assert block_m % chunk == 0 and chunk % 128 == 0

    # Pad the batch instead of asserting divisibility (pad only when needed).
    B_pad = int(block_m * pl.cdiv(B, block_m))
    # TODO(synk): x.T (+ pad) is still one extra XLA HBM pass over x (~2x input
    # traffic); an interleaved (1, 2B) input with an in-kernel even/odd lane
    # de-interleave would remove it at the cost of an XLU shuffle.
    x_t = x.T                                 # (in_dim, B), feature-major slab
    if B_pad != B:
        x_t = jnp.pad(x_t, ((0, 0), (0, B_pad - B)))

    # Pre-broadcast biases to chunk width so the in-kernel bias add is a plain
    # vld + vadd instead of a per-iteration broadcast.
    b1c = jnp.broadcast_to(jnp.reshape(b1, (dim, 1)), (dim, chunk))
    b2c = jnp.broadcast_to(jnp.reshape(b2, (dim, 1)), (dim, chunk))
    b3c = jnp.broadcast_to(jnp.reshape(b3, (out_dim, 1)), (out_dim, chunk))

    grid = (B_pad // block_m,)
    resident = lambda i: (0, 0)               # weights/biases: same block every step

    out_t = pl.pallas_call(
        _make_mlp_kernel(chunk),
        out_shape=jax.ShapeDtypeStruct((out_dim, B_pad), jnp.float32),
        grid_spec=pltpu.PrefetchScalarGridSpec(
            num_scalar_prefetch=0,
            grid=grid,
            in_specs=[
                pl.BlockSpec((in_dim, block_m), lambda i: (0, i)),
                pl.BlockSpec((dim, in_dim), resident),
                pl.BlockSpec((dim, chunk), resident),
                pl.BlockSpec((dim, dim), resident),
                pl.BlockSpec((dim, chunk), resident),
                pl.BlockSpec((out_dim, dim), resident),
                pl.BlockSpec((out_dim, chunk), resident),
            ],
            out_specs=pl.BlockSpec((out_dim, block_m), lambda i: (0, i)),
        ),
        compiler_params=pltpu.CompilerParams(
            dimension_semantics=("parallel",),
            vmem_limit_bytes=32 * 1024 * 1024,
        ),
    )(x_t, w1, b1c, w2, b2c, w3, b3c)

    return out_t[:, :B].T                     # back to PyTorch (B, out_dim)


def init_params(key, in_dim=2, out_dim=1, dim=32):
    # init_type='normal': N(0, 0.02) weights, zero biases, PyTorch layout.
    k1, k2, k3 = jax.random.split(key, 3)
    std = 0.02
    return {
        "w1": std * jax.random.normal(k1, (dim, in_dim), jnp.float32),
        "b1": jnp.zeros((dim, 1), jnp.float32),
        "w2": std * jax.random.normal(k2, (dim, dim), jnp.float32),
        "b2": jnp.zeros((dim, 1), jnp.float32),
        "w3": std * jax.random.normal(k3, (out_dim, dim), jnp.float32),
        "b3": jnp.zeros((out_dim, 1), jnp.float32),
    }


def mlp_forward_ref(x, p):
    h = x @ p["w1"].T + p["b1"].T
    h = jnp.where(h > 0, h, NEG_SLOPE * h)
    h = h @ p["w2"].T + p["b2"].T
    h = jnp.where(h > 0, h, NEG_SLOPE * h)
    return h @ p["w3"].T + p["b3"].T


if __name__ == "__main__":
    key = jax.random.PRNGKey(0)
    kx, kp = jax.random.split(key)

    B, IN_DIM, OUT_DIM, DIM = 256, 2, 1, 32
    x = jax.random.normal(kx, (B, IN_DIM), jnp.float32)
    params = init_params(kp, in_dim=IN_DIM, out_dim=OUT_DIM, dim=DIM)

    # Even batch: block_m=128 -> grid=(2,), single-chunk path.
    out = jax.block_until_ready(mlp_forward(x, params))
    ref = mlp_forward_ref(x, params)
    assert out.shape == (B, OUT_DIM)
    assert jnp.allclose(out, ref, atol=1e-5, rtol=1e-5), float(jnp.max(jnp.abs(out - ref)))

    # Ragged batch: exercises the pad-and-slice path (no divisibility assert).
    B2 = 200
    x2 = jax.random.normal(jax.random.PRNGKey(1), (B2, IN_DIM), jnp.float32)
    out2 = jax.block_until_ready(mlp_forward(x2, params))
    ref2 = mlp_forward_ref(x2, params)
    assert out2.shape == (B2, OUT_DIM)
    assert jnp.allclose(out2, ref2, atol=1e-5, rtol=1e-5), float(jnp.max(jnp.abs(out2 - ref2)))

    # Larger batch: exercises the chunked inner fori_loop (block_m=1024, chunk=512).
    B3 = 2048
    x3 = jax.random.normal(jax.random.PRNGKey(2), (B3, IN_DIM), jnp.float32)
    out3 = jax.block_until_ready(mlp_forward(x3, params))
    ref3 = mlp_forward_ref(x3, params)
    assert out3.shape == (B3, OUT_DIM)
    assert jnp.allclose(out3, ref3, atol=1e-5, rtol=1e-5), float(jnp.max(jnp.abs(out3 - ref3)))

    print("KERNEL_OK")
</pallas_src>

<mosaic_0001>
module attributes {stable_mosaic.version = 11 : i64} {
  func.func @mlp_kernel(%arg0: i32, %arg1: memref<2x128xf32, #tpu.memory_space<vmem>>, %arg2: memref<32x2xf32, #tpu.memory_space<vmem>>, %arg3: memref<32x128xf32, #tpu.memory_space<vmem>>, %arg4: memref<32x32xf32, #tpu.memory_space<vmem>>, %arg5: memref<32x128xf32, #tpu.memory_space<vmem>>, %arg6: memref<1x32xf32, #tpu.memory_space<vmem>>, %arg7: memref<1x128xf32, #tpu.memory_space<vmem>>, %arg8: memref<1x128xf32, #tpu.memory_space<vmem>>) attributes {dimension_semantics = [#tpu.dimension_semantics<parallel>], iteration_bounds = array<i64: 2>, scalar_prefetch = 0 : i64, scratch_operands = 0 : i64, tpu.core_type = #tpu.core_type<tc>, window_params = [{transform_indices = @transform_0, window_bounds = array<i64: 2, 128>}, {pipeline_mode = #tpu.pipeline_mode<synchronous>, transform_indices = @transform_1, window_bounds = array<i64: 32, 2>}, {pipeline_mode = #tpu.pipeline_mode<synchronous>, transform_indices = @transform_2, window_bounds = array<i64: 32, 128>}, {pipeline_mode = #tpu.pipeline_mode<synchronous>, transform_indices = @transform_3, window_bounds = array<i64: 32, 32>}, {pipeline_mode = #tpu.pipeline_mode<synchronous>, transform_indices = @transform_4, window_bounds = array<i64: 32, 128>}, {pipeline_mode = #tpu.pipeline_mode<synchronous>, transform_indices = @transform_5, window_bounds = array<i64: 1, 32>}, {pipeline_mode = #tpu.pipeline_mode<synchronous>, transform_indices = @transform_6, window_bounds = array<i64: 1, 128>}, {transform_indices = @transform_7, window_bounds = array<i64: 1, 128>}]} {
    %c0 = arith.constant 0 : index
    %c0_0 = arith.constant 0 : index
    %0 = vector.load %arg2[%c0, %c0_0] : memref<32x2xf32, #tpu.memory_space<vmem>>, vector<32x2xf32>
    %c0_1 = arith.constant 0 : index
    %c0_2 = arith.constant 0 : index
    %1 = vector.load %arg4[%c0_1, %c0_2] : memref<32x32xf32, #tpu.memory_space<vmem>>, vector<32x32xf32>
    %c0_3 = arith.constant 0 : index
    %c0_4 = arith.constant 0 : index
    %2 = vector.load %arg6[%c0_3, %c0_4] : memref<1x32xf32, #tpu.memory_space<vmem>>, vector<1x32xf32>
    %c0_5 = arith.constant 0 : index
    %c0_6 = arith.constant 0 : index
    %3 = vector.load %arg1[%c0_5, %c0_6] : memref<2x128xf32, #tpu.memory_space<vmem>>, vector<2x128xf32>
    %cst = arith.constant dense<0.000000e+00> : vector<32x128xf32>
    %4 = tpu.matmul %0, %3, %cst {dimension_numbers = #tpu.dot_dimension_numbers<[1], [0], [0], [1], [0, 0, 1, 1], [], []>, precision = #tpu.contract_precision<fp32>} : vector<32x2xf32>, vector<2x128xf32>, vector<32x128xf32> -> vector<32x128xf32>
    %c0_7 = arith.constant 0 : index
    %c0_8 = arith.constant 0 : index
    %5 = vector.load %arg3[%c0_7, %c0_8] : memref<32x128xf32, #tpu.memory_space<vmem>>, vector<32x128xf32>
    %6 = arith.addf %4, %5 : vector<32x128xf32>
    %cst_9 = arith.constant 2.000000e-01 : f32
    %7 = vector.broadcast %cst_9 : f32 to vector<32x128xf32>
    %8 = arith.mulf %7, %6 : vector<32x128xf32>
    %9 = arith.maximumf %6, %8 : vector<32x128xf32>
    %cst_10 = arith.constant dense<0.000000e+00> : vector<32x128xf32>
    %10 = tpu.matmul %1, %9, %cst_10 {dimension_numbers = #tpu.dot_dimension_numbers<[1], [0], [0], [1], [0, 0, 1, 1], [], []>} : vector<32x32xf32>, vector<32x128xf32>, vector<32x128xf32> -> vector<32x128xf32>
    %c0_11 = arith.constant 0 : index
    %c0_12 = arith.constant 0 : index
    %11 = vector.load %arg5[%c0_11, %c0_12] : memref<32x128xf32, #tpu.memory_space<vmem>>, vector<32x128xf32>
    %12 = arith.addf %10, %11 : vector<32x128xf32>
    %cst_13 = arith.constant 2.000000e-01 : f32
    %13 = vector.broadcast %cst_13 : f32 to vector<32x128xf32>
    %14 = arith.mulf %13, %12 : vector<32x128xf32>
    %15 = arith.maximumf %12, %14 : vector<32x128xf32>
    %cst_14 = arith.constant dense<0.000000e+00> : vector<1x128xf32>
    %16 = tpu.matmul %2, %15, %cst_14 {dimension_numbers = #tpu.dot_dimension_numbers<[1], [0], [0], [1], [0, 0, 1, 1], [], []>} : vector<1x32xf32>, vector<32x128xf32>, vector<1x128xf32> -> vector<1x128xf32>
    %c0_15 = arith.constant 0 : index
    %c0_16 = arith.constant 0 : index
    %17 = vector.load %arg7[%c0_15, %c0_16] : memref<1x128xf32, #tpu.memory_space<vmem>>, vector<1x128xf32>
    %18 = arith.addf %16, %17 : vector<1x128xf32>
    %c0_17 = arith.constant 0 : index
    %c0_18 = arith.constant 0 : index
    %19 = vector.load %arg8[%c0_17, %c0_18] : memref<1x128xf32, #tpu.memory_space<vmem>>, vector<1x128xf32>
    tpu.vector_store %arg8[%c0_17, %c0_18], %18 {strides = array<i32>} : memref<1x128xf32, #tpu.memory_space<vmem>>, vector<1x128xf32>,
    return
  }
  func.func @transform_0(%arg0: i32) -> (i32, i32) {
    %c0_i32 = arith.constant 0 : i32
    %c0_i32_0 = arith.constant 0 : i32
    return %c0_i32, %arg0 : i32, i32
  }
  func.func @transform_1(%arg0: i32) -> (i32, i32) {
    %c0_i32 = arith.constant 0 : i32
    %c0_i32_0 = arith.constant 0 : i32
    %c0_i32_1 = arith.constant 0 : i32
    return %c0_i32, %c0_i32_0 : i32, i32
  }
  func.func @transform_2(%arg0: i32) -> (i32, i32) {
    %c0_i32 = arith.constant 0 : i32
    %c0_i32_0 = arith.constant 0 : i32
    %c0_i32_1 = arith.constant 0 : i32
    return %c0_i32, %c0_i32_0 : i32, i32
  }
  func.func @transform_3(%arg0: i32) -> (i32, i32) {
    %c0_i32 = arith.constant 0 : i32
    %c0_i32_0 = arith.constant 0 : i32
    %c0_i32_1 = arith.constant 0 : i32
    return %c0_i32, %c0_i32_0 : i32, i32
  }
  func.func @transform_4(%arg0: i32) -> (i32, i32) {
    %c0_i32 = arith.constant 0 : i32
    %c0_i32_0 = arith.constant 0 : i32
    %c0_i32_1 = arith.constant 0 : i32
    return %c0_i32, %c0_i32_0 : i32, i32
  }
  func.func @transform_5(%arg0: i32) -> (i32, i32) {
    %c0_i32 = arith.constant 0 : i32
    %c0_i32_0 = arith.constant 0 : i32
    %c0_i32_1 = arith.constant 0 : i32
    return %c0_i32, %c0_i32_0 : i32, i32
  }
  func.func @transform_6(%arg0: i32) -> (i32, i32) {
    %c0_i32 = arith.constant 0 : i32
    %c0_i32_0 = arith.constant 0 : i32
    %c0_i32_1 = arith.constant 0 : i32
    return %c0_i32, %c0_i32_0 : i32, i32
  }
  func.func @transform_7(%arg0: i32) -> (i32, i32) {
    %c0_i32 = arith.constant 0 : i32
    %c0_i32_0 = arith.constant 0 : i32
    return %c0_i32, %arg0 : i32, i32
  }
}

</mosaic_0001>

<bundles_post_ra>
// kernel: tpu_custom_call.1
= control target key start
LH: loop header
LB: loop body
LE: loop exit
PB: predicated region body
PF: predicated region fallthrough
CT: control target
= control target key end

     0   :  { %12 = vsyncpa [#allocation3], 0  ;;  %s1811_s0 = inlined_call_operand.vmem [shape: f32[2,256], index: 0, kind: input, shape index: {}]   ;;  %s1812_s1 = inlined_call_operand.vmem [shape: f32[32,2], index: 1, kind: input, shape index: {}]   ;;  %s1813_s2 = inlined_call_operand.vmem [shape: f32[32,128], index: 2, kind: input, shape index: {}]   ;;  %s1814_s3 = inlined_call_operand.hbm [shape: f32[32,32], index: 3, kind: input, shape index: {}]   ;;  %s1815_s4 = inlined_call_operand.hbm [shape: f32[32,128], index: 4, kind: input, shape index: {}]   ;;  %s1816_s5 = inlined_call_operand.vmem [shape: f32[1,32], index: 5, kind: input, shape index: {}]   ;;  %s1817_s6 = inlined_call_operand.vmem [shape: f32[1,128], index: 6, kind: input, shape index: {}]   ;;  %s1818_s7 = inlined_call_operand.hbm [shape: f32[1,256], index: 7, kind: output, shape index: {}]  }
   0x1   :  { %13 = vsyncpa [#allocation6], 0 }
   0x2   :  { %14 = vsyncpa [#allocation4], 0 }
   0x3   :  { %16 = vsyncpa [#allocation4 + $0x1], 0  ;;  %s1604_s24 = smov 0   ;;  %s1606_s25 = smov 0  }
   0x4   :  { %s1608_s26 = smov 0   ;;  %s1610_s27 = smov 0  }
   0x5 LB: > { %s1625_s28 = sadd.s32 4294967295, %s1554_s27   ;;  %s1192_s29 = sadd.s32 4294967294, %s1554_s27   ;;  %s1554_s27 = sphi %s1610_s27, %s1838_s27   ;;  %s1550_s26 = sphi %s1608_s26, %s1837_s26   ;;  %s1546_s25 = sphi %s1606_s25, %s1836_s25   ;;  %s1542_s24 = sphi %s1604_s24, %s1835_s24  }
   0x6   : > { %s1629_s30 = sadd.s32 1, %s1554_s27   ;;  %s181_s8 = sadd.s32 1, %s1550_s26 }
   0x7   : > { %s178_s9 = ssub.s32 %s1554_s27, %s1629_s30  ;;  %p191_p0 = scmp.ne.s32.totalorder %s1550_s26, %s1546_s25 }
   0x8   : > { %p179_p1 = scmp.eq.s32.totalorder %s178_s9, 0  ;;  %p192_p2 = scmp.eq.s32.totalorder %s1625_s28, 1 }
   0x9   : > { %p197_p3 = scmp.ne.s32.totalorder %s1546_s25, %s1542_s24  ;;  %p198_p4 = scmp.eq.s32.totalorder %s1192_s29, 1 }
   0xa   : > { %s1640_s10 = scalar_select %p179_p1, %s1550_s26, %s181_s8  }
   0xb   : > { %p1642_p5 = por %p192_p2, %p191_p0  ;;  %p1646_p6 = por %p198_p4, %p197_p3 }
   0xc   : > { %1822 = sst [smem:[#allocation11_spill]] %s1640_s10  ;;  %p1193_p7 = scmp.ge.s32.totalorder %s1554_s27, 1 }
   0xd   : > { %s1823_s11 = scalar_select %p1642_p5, 1, 0 }
   0xe   : > { %s1824_s12 = scalar_select %p1646_p6, 1, 0 }
   0xf   : > { %p205_p8 = scmp.lt.s32.totalorder %s1554_s27, 3  ;;  %p1819_p9 = scmp.eq.s32.totalorder %s1625_s28, 0 }
  0x10   : > { %s1556_s14 = smov [#allocation2]   ;;  %s1557_s17 = smov [#allocation5]  }
  0x11   : > { %p1653_p10 = pnand %p1193_p7, %p205_p8  ;;  %s223_s15 = sshll.u32 %s1556_s14, 4  ;;  %s224_s15 = int_to_ptr.vmem [resolvable:$true] %s223_s15 }
  0x12   : > { %s236_s18 = sshll.u32 %s1557_s17, 4  ;;  %s1428_s21 = scalar_lea.hbm %s1814_s3, 512  ;;  %s1665_s18 = int_to_ptr.vmem [resolvable:$true] %s236_s18 }
  0x13   : > { %s1825_s13 = scalar_select %p1653_p10, 1, 0 }
  0x14   : > { %p1373_p11 = pneg %p1653_p10  ;;  %p1429_p13 = scmp.ne.s32.totalorder %s1814_s3, %s1428_s21 }
  0x15   : > { %p1435_p3 = scmp.lt.u32.totalorder %s1428_s21, %s1814_s3 }
  0x16   : > { %p1661_p12 = pnand %p1819_p9, %p1373_p11 }
  0x18   : > { %p1430_p0 = pneg %p1661_p12 }
  0x1a   : > { %p1431_p1 = pnand %p1430_p0, %p1429_p13 }
  0x1c   : > { %p1432_p2 = pneg %p1431_p1 }
  0x1e   : > { %p1437_p4 = pnand %p1435_p3, %p1432_p2 }
  0x20   : > { %1440 = shalt.err (!%p1437_p4)
}
  0x21   : > { %s1441_s9 = scalar_lea.vmem %s224_s15, 512  ;;  %p1449_p9 = scmp.lt.s32.totalorder %s224_s15, %s224_s15 }
  0x22   : > { %p1442_p7 = scmp.ne.s32.totalorder %s224_s15, %s1441_s9  ;;  %p1450_p6 = scmp.lt.s32.totalorder %s1441_s9, %s1441_s9 }
  0x24   : > { %p1444_p8 = pnand %p1442_p7, %p1430_p0  ;;  %p1451_p5 = por %p1450_p6, %p1449_p9 }
  0x26   : > { %p1445_p11 = pneg %p1444_p8 }
  0x28   : > { %p1452_p10 = pnand %p1451_p5, %p1445_p11 }
  0x2a   : > { %1455 = shalt.err (!%p1452_p10)
}
  0x2b   : > { %s1558_s14 = smov 128   ;;  %s1559_s17 = smov 8  }
  0x2c   : > { %1376 = dma.hbm_to_vmem [thread:$0]  (!%p1661_p12), %s1814_s3, 512, %s224_s15, [#allocation3], %s1558_s14, %s1558_s14, %s1559_s17  }
  0x2d   : > { %s1456_s23 = scalar_lea.hbm %s1815_s4, 512 }
  0x2e   : > { %p1457_p13 = scmp.ne.s32.totalorder %s1815_s4, %s1456_s23  ;;  %p1463_p9 = scmp.lt.u32.totalorder %s1456_s23, %s1815_s4 }
  0x30   : > { %p1459_p5 = pnand %p1457_p13, %p1430_p0 }
  0x32   : > { %p1460_p6 = pneg %p1459_p5 }
  0x34   : > { %p1465_p10 = pnand %p1463_p9, %p1460_p6 }
  0x36   : > { %1468 = shalt.err (!%p1465_p10)
}
  0x37   : > { %s1469_s15 = scalar_lea.vmem %s1665_s18, 512  ;;  %p1477_p4 = scmp.lt.s32.totalorder %s1665_s18, %s1665_s18 }
  0x38   : > { %p1470_p1 = scmp.ne.s32.totalorder %s1665_s18, %s1469_s15  ;;  %p1478_p7 = scmp.lt.s32.totalorder %s1469_s15, %s1469_s15 }
  0x3a   : > { %p1472_p2 = pnand %p1470_p1, %p1430_p0  ;;  %p1479_p8 = por %p1478_p7, %p1477_p4 }
  0x3c   : > { %p1473_p3 = pneg %p1472_p2 }
  0x3e   : > { %p1480_p11 = pnand %p1479_p8, %p1473_p3 }
  0x40   : > { %1483 = shalt.err (!%p1480_p11)
}
  0x41   : > { %1379 = dma.hbm_to_vmem [thread:$0]  (!%p1661_p12), %s1815_s4, 512, %s1665_s18, [#allocation6], %s1558_s14, %s1558_s14, %s1559_s17  }
  0x42   : > { %p1827_p13 = scmp.ne.s32.totalorder %s1825_s13, 0 }
  0x43   : > { %p1828_p5 = scmp.eq.s32.totalorder (!%p1827_p13), %s1625_s28, 0 }
  0x44   : > { %265 = sbr.rel (%p1827_p13) target bundleno = 803 (0x323), region = 48 }
  0x4b   : > { %1529 = dma.done.wait (%p1828_p5), [#allocation3], 512   ;;  %p1829_p0 = pmov %p1828_p5 }
  0x4d   : > { %1531 = vsyncadd (%p1829_p0), [#allocation3], 4294966784  ;;  %p1830_p6 = pmov %p1829_p0 }
  0x4e   : > { %p1831_p9 = pmov %p1829_p0 }
  0x4f   : > { %1533 = dma.done.wait (%p1830_p6), [#allocation6], 512  }
  0x50   : > { %1535 = vsyncadd (%p1831_p9), [#allocation6], 4294966784  ;;  %p299_p10 = scmp.lt.s32.totalorder %s1625_s28, 1  ;;  %vm330_vm0 = vcmask 1041408   ;;  %vm317_vm1 = vcmask 15360   ;;  %v303_v1 = vld [vmem:[%s1812_s1] sm:$0xff] }
  0x51   : > { %v304_v2 = vld [vmem:[%s1812_s1 + $0x8] sm:$0xff]  ;;  %v319_v4 = vsel %vm317_vm1, %v303_v1, 0  ;;  %v305_v6 = vld [vmem:[%s1812_s1 + $0x10] sm:$0xff]  ;;  %v306_v7 = vld [vmem:[%s1812_s1 + $0x18] sm:$0xff]  ;;  %vm921_vm2 = vcmask 261120   ;;  %vm1561_vm3 = vmmov 0  }
  0x52   : > { %s300_s16 = scalar_select %p299_p10, %s1625_s28, 1  ;;  %v322_v5 = vsel %vm317_vm1, %v304_v2, 0  ;;  %v400_v9 = vand.u32 4294901760, %v319_v4  ;;  %v325_v11 = vsel %vm317_vm1, %v305_v6, 0  ;;  %v328_v13 = vsel %vm317_vm1, %v306_v7, 0  ;;  %v307_v35 = vld [vmem:[#allocation2] sm:$0xff] }
  0x53   : > { %v410_v10 = vand.u32 4294901760, %v322_v5  ;;  %v420_v12 = vand.u32 4294901760, %v325_v11  ;;  %v430_v17 = vand.u32 4294901760, %v328_v13  ;;  %v314_v40 = vld [vmem:[%s1813_s2 + $0x8] sm:$0xff]  ;;  %v313_v41 = vld [vmem:[%s1813_s2] sm:$0xff]  ;;  %v316_v44 = vld [vmem:[%s1813_s2 + $0x18] sm:$0xff] }
  0x54   : > { %s1200_s18 = sshll.u32 %s300_s16, 1  ;;  %v401_v15 = vsub.f32 %v319_v4, %v400_v9  ;;  %v315_v46 = vld [vmem:[%s1813_s2 + $0x10] sm:$0xff]  ;;  %v308_v2 = vld [vmem:[#allocation2 + $0x8] sm:$0xff]  ;;  %v310_v4 = vld [vmem:[#allocation2 + $0x18] sm:$0xff]  ;;  %v1562_v6 = vmov 0.0   ;;  %s297_s23 = sand.u32 1, %s1546_s25  }
  0x55   : > { %s302_s17 = scalar_lea.vmem %s1811_s0, %s1200_s18  ;;  %v411_v16 = vsub.f32 %v322_v5, %v410_v10  ;;  %v421_v18 = vsub.f32 %v325_v11, %v420_v12  ;;  %v431_v20 = vsub.f32 %v328_v13, %v430_v17  ;;  %v1560_v5 = vmov 0.0|0.0   ;;  %v918_v7 = vld [vmem:[#allocation5 + $0x8] sm:$0xff]  ;;  %v920_v13 = vld [vmem:[#allocation5 + $0x18] sm:$0xff]  ;;  %s1206_s9 = sshll.u32 %s1625_s28, 4 }
  0x56   : > { %v312_v0 = vld [vmem:[%s302_s17] sm:$0x3]  ;;  %1270 = vmatprep.mubr.f32.mxu0 %v401_v15  ;;  %v402_v19 = vand.u32 4294901760, %v401_v15  ;;  %s298_s15 = scalar_lea.vmem [#allocation7], %s297_s23  ;;  %s1769_s18 = scalar_lea.hbm %s1818_s7, %s1206_s9 }
  0x57   : > { %v332_v3 = vsel %vm330_vm0, %v312_v0, 0  ;;  %v412_v21 = vand.u32 4294901760, %v411_v16  ;;  %v422_v23 = vand.u32 4294901760, %v421_v18  ;;  %v432_v26 = vand.u32 4294901760, %v431_v20  ;;  %s1115_s10 = sshll.u32 %s298_s15, 4  ;;  %s1103_s14 = scalar_lea.sflag [#allocation4], %s297_s23  ;;  %s1771_s10 = int_to_ptr.vmem [resolvable:$true] %s1115_s10 }
  0x58   : > { %v335_v8 = vand.u32 4294901760, %v332_v3  ;;  %v403_v24 = vsub.f32 %v401_v15, %v402_v19  ;;  %v919_v15 = vld [vmem:[#allocation5 + $0x10] sm:$0xff]  ;;  %s1484_s13 = scalar_lea.vmem %s1771_s10, 16  ;;  %p1832_p1 = scmp.ne.s32.totalorder %s1823_s11, 0 }
  0x59   : > { %v413_v25 = vsub.f32 %v411_v16, %v412_v21  ;;  %v423_v28 = vsub.f32 %v421_v18, %v422_v23  ;;  %v433_v31 = vsub.f32 %v431_v20, %v432_v26  ;;  %p1485_p12 = scmp.ne.s32.totalorder %s1771_s10, %s1484_s13  ;;  %s1563_s28 = smov [#allocation7]  }
  0x5a   : > { %v442_v14 = vsub.f32 %v332_v3, %v335_v8  ;;  %1252 = vmatprep.subr.mxu1 %v335_v8  ;;  %v404_v29 = vand.u32 4294901760, %v403_v24  ;;  %v309_v3 = vld [vmem:[#allocation2 + $0x10] sm:$0xff]  ;;  %s1488_s17 = sshll.u32 %s1563_s28, 4  ;;  %s1489_s17 = int_to_ptr.vmem [resolvable:$false] %s1488_s17 }
  0x5b   : > { %1253 = vmatpush3.msra.mxu1 %v335_v8  ;;  %v414_v30 = vand.u32 4294901760, %v413_v25  ;;  %v424_v33 = vand.u32 4294901760, %v423_v28  ;;  %v434_v34 = vand.u32 4294901760, %v433_v31  ;;  %p1486_p2 = pnand %p1485_p12, %p1832_p1  ;;  %s1490_s20 = scalar_lea.vmem %s1489_s17, 32 }
  0x5c   : > { %1268 = vmatprep.subr.mxu0 %v442_v14  ;;  %v443_v22 = vand.u32 4294901760, %v442_v14  ;;  %1254 = vmatprep.mubr.f32.mxu1 %v404_v29  ;;  %v311_v29 = vld [vmem:[%s1816_s5] sm:$0x1]  ;;  %p1491_p4 = scmp.lt.s32.totalorder %s1771_s10, %s1489_s17  ;;  %p1492_p7 = scmp.lt.s32.totalorder %s1490_s20, %s1484_s13 }
  0x5d   : > { %1269 = vmatpush3.msra.mxu0 %v442_v14  ;;  %1255 = vmatmul.mubr.f32.vlgmr.msra.gmra.mrb[0].mxu1 %v414_v30  ;;  %v1027_v30 = vld [vmem:[%s1817_s6] sm:$0x1]  ;;  %p1487_p3 = pneg %p1486_p2 }
  0x5e   : > { %1271 = vmatmul.mubr.f32.vlgmr.msra.gmra.mrb[0].mxu0 %v411_v16  ;;  %1276 = vmatprep.subr.mxu0 %v335_v8  ;;  %v444_v27 = vsub.f32 %v442_v14, %v443_v22  ;;  %p1493_p8 = por %p1492_p7, %p1491_p4 }
  0x5f   : > { %1277 = vmatpush3.msra.mxu0 %v335_v8  ;;  %1273 = vmatprep.mubr.f32.mxu0 %v421_v18 }
  0x60   : > { %1284 = vmatprep.subr.mxu0 %v443_v22  ;;  %v445_v32 = vand.u32 4294901760, %v444_v27  ;;  %1257 = vmatprep.mubr.f32.mxu1 %v424_v33  ;;  %p1494_p11 = pnand %p1493_p8, %p1487_p3 }
  0x61   : > { %1258 = vmatmul.mubr.f32.gmra.mrb[2].mxu1 %v434_v34 }
  0x62   : > { %1274 = vmatmul.mubr.f32.gmra.mrb[2].mxu0 %v431_v20  ;;  %1260 = vmatprep.subr.mxu1 %v445_v32 }
  0x63   : > { %1278 = vmatprep.mubr.f32.mxu0 %v402_v19  ;;  %1261 = vmatpush3.msra.mxu1 %v445_v32 }
  0x64   : > { %1262 = vmatprep.mubr.f32.mxu1 %v400_v9 }
  0x65   : > { %1263 = vmatmul.mubr.f32.vlgmr.msra.gmra.mrb[0].mxu1 %v410_v10 }
  0x66   : > { %1279 = vmatmul.mubr.f32.vlgmr.msra.gmra.mrb[0].mxu0 %v412_v21  ;;  %1265 = vmatprep.mubr.f32.mxu1 %v420_v12 }
  0x67   : > { %1285 = vmatpush3.msra.mxu0 %v443_v22  ;;  %1281 = vmatprep.mubr.f32.mxu0 %v422_v23 }
  0x68   : > { %1292 = vmatprep.subr.mxu0 %v335_v8 }
  0x69   : > { %1266 = vmatmul.mubr.f32.gmra.mrb[2].mxu1 %v430_v17 }
  0x6a   : > { %1282 = vmatmul.mubr.f32.gmra.mrb[2].mxu0 %v432_v26  ;;  %1308 = vmatprep.mubr.msk.f32.mxu1 %vm921_vm2, %v307_v35 }
  0x6b   : > { %1286 = vmatprep.mubr.f32.mxu0 %v400_v9 }
  0x6e   : > { %1287 = vmatmul.mubr.f32.vlgmr.msra.gmra.mrb[0].mxu0 %v410_v10 }
  0x6f   : > { %1293 = vmatpush3.msra.mxu0 %v335_v8  ;;  %1289 = vmatprep.mubr.f32.mxu0 %v420_v12  ;;  %v917_v8 = vld [vmem:[#allocation5] sm:$0xff] }
  0x72   : > { %1290 = vmatmul.mubr.f32.gmra.mrb[2].mxu0 %v430_v17 }
  0x73   : > { %1294 = vmatprep.mubr.f32.mxu0 %v400_v9 }
  0x76   : > { %1295 = vmatmul.mubr.f32.vlgmr.msra.gmra.mrb[0].mxu0 %v410_v10 }
  0x77   : > { %1297 = vmatprep.mubr.f32.mxu0 %v420_v12 }
  0x7a   : > { %1298 = vmatmul.mubr.f32.gmra.mrb[2].mxu0 %v430_v17 }
 0x138   : > { %v1264_v36 = vpop.f32.mrb[0].mxu1 }
 0x139   : > { %v512_v37 = vpop.f32.mrb[1].mxu1  ;;  %v1339_v42 = vadd.f32 %v1264_v36, %v314_v40 }
 0x13a   : > { %v1341_v43 = vadd.f32 %v512_v37, %v313_v41 }
 0x13c   : > { %v1267_v38 = vpop.f32.mrb[2].mxu1 }
 0x13d   : > { %v524_v39 = vpop.f32.mrb[3].mxu1  ;;  %v1343_v50 = vadd.f32 %v1267_v38, %v316_v44 }
 0x13e   : > { %v1345_v52 = vadd.f32 %v524_v39, %v315_v46 }
 0x149   : > { %v1296_v45 = vpop.f32.mrb[0].mxu0 }
 0x14a   : > { %v1340_v47 = vadd.f32 %v1339_v42, %v1296_v45  ;;  %v887_v48 = vpop.f32.mrb[1].mxu0 }
 0x14b   : > { %v1342_v49 = vadd.f32 %v1341_v43, %v887_v48 }
 0x14c   : > { %v910_v51 = vmul.f32 0.2, %v1340_v47 }
 0x14d   : > { %v909_v53 = vmul.f32 0.2, %v1342_v49  ;;  %v1299_v54 = vpop.f32.mrb[2].mxu0 }
 0x14e   : > { %v914_v55 = vmax.f32 %v1340_v47, %v910_v51  ;;  %v1344_v56 = vadd.f32 %v1343_v50, %v1299_v54  ;;  %v899_v57 = vpop.f32.mrb[3].mxu0 }
 0x14f   : > { %v913_v58 = vmax.f32 %v1342_v49, %v909_v53  ;;  %v1346_v59 = vadd.f32 %v1345_v52, %v899_v57 }
 0x150   : > { %v912_v60 = vmul.f32 0.2, %v1344_v56 }
 0x151   : > { %v911_v61 = vmul.f32 0.2, %v1346_v59  ;;  %v1325_v62 = vpack.c.bf16 %v914_v55, %v913_v58 }
 0x152   : > { %v916_v63 = vmax.f32 %v1344_v56, %v912_v60 }
 0x153   : > { %v915_v0 = vmax.f32 %v1346_v59, %v911_v61  ;;  %1326 = vmatprep.subr.bf16.mxu1 %v1325_v62 }
 0x154   : > { %1328 = vmatpush3.bf16.msra.mxu1 %v1325_v62 }
 0x155   : > { %v1329_v1 = vpack.c.bf16 %v916_v63, %v915_v0 }
 0x157   : > { %1330 = vmatprep.subr.bf16.mxu1 %v1329_v1 }
 0x158   : > { %1332 = vmatpush3.bf16.msra.mxu1 %v1329_v1 }
 0x159   : > { %1333 = vmatprep.subr.bf16.mxu1 %v1560_v5 }
 0x15b   : > { %1309 = vmatmul.mubr.msk.f32.vlgmr.msra.gmra.mrb[4].mxu1 %vm921_vm2, %v308_v2 }
 0x15c   : > { %1311 = vmatprep.mubr.msk.f32.mxu1 %vm921_vm2, %v309_v3 }
 0x15f   : > { %1312 = vmatmul.mubr.msk.f32.gmra.mrb[6].mxu1 %vm921_vm2, %v310_v4 }
 0x160   : > { %1322 = vmatprep.mubr.msk.f32.mxu1 %vm1561_vm3, %v1562_v6 }
 0x22e   : > { %v1310_v9 = vpop.f32.mrb[4].mxu1 }
 0x22f   : > { %v1006_v10 = vadd.f32 %v1310_v9, %v918_v7  ;;  %v1000_v11 = vpop.f32.mrb[5].mxu1 }
 0x230   : > { %v1001_v12 = vadd.f32 %v1000_v11, %v917_v8 }
 0x231   : > { %v1020_v14 = vmul.f32 0.2, %v1006_v10 }
 0x232   : > { %v1019_v16 = vmul.f32 0.2, %v1001_v12  ;;  %v1313_v17 = vpop.f32.mrb[6].mxu1 }
 0x233   : > { %v1024_v18 = vmax.f32 %v1006_v10, %v1020_v14  ;;  %v1016_v19 = vadd.f32 %v1313_v17, %v920_v13  ;;  %v1010_v20 = vpop.f32.mrb[7].mxu1 }
 0x234   : > { %v1023_v21 = vmax.f32 %v1001_v12, %v1019_v16  ;;  %v1011_v22 = vadd.f32 %v1010_v20, %v919_v15 }
 0x235   : > { %v1022_v23 = vmul.f32 0.2, %v1016_v19 }
 0x236   : > { %v1334_v24 = vpack.c.bf16 %v1024_v18, %v1023_v21  ;;  %v1021_v25 = vmul.f32 0.2, %v1011_v22 }
 0x237   : > { %v1026_v26 = vmax.f32 %v1016_v19, %v1022_v23 }
 0x238   : > { %v1025_v27 = vmax.f32 %v1011_v22, %v1021_v25  ;;  %1335 = vmatpush3.bf16.msra.mxu1 %v1334_v24 }
 0x239   : > { %1336 = vmatprep.subr.bf16.mxu1 %v1560_v5 }
 0x23a   : > { %v1337_v28 = vpack.c.bf16 %v1026_v26, %v1025_v27 }
 0x23c   : > { %1338 = vmatpush3.bf16.msra.mxu1 %v1337_v28 }
 0x23f   : > { %1323 = vmatmul.mubr.msk.f32.vlgmr.msra.gmra.mrb[8].mxu1 %vm921_vm2, %v311_v29 }
 0x312   : > { %v1097_v31 = vpop.f32.mrb[8].mxu1 }
 0x313   : > { %v1098_v32 = vadd.f32 %v1097_v31, %v1027_v30  ;;  %v1324_v33 = vpop.f32.mrb[9].mxu1 }
 0x315   : > { %1101 = vst [vmem:[%s298_s15] sm:$0x1] %v1098_v32 }
 0x316   : > { %1497 = shalt.err (!%p1494_p11)
}
 0x317   : > { %s1498_s21 = scalar_lea.hbm %s1769_s18, 16  ;;  %s1502_s29 = scalar_lea.hbm %s1818_s7, 32 }
 0x318   : > { %p1499_p13 = scmp.ne.s32.totalorder %s1769_s18, %s1498_s21  ;;  %p1503_p6 = scmp.lt.u32.totalorder %s1769_s18, %s1818_s7 }
 0x319   : > { %p1504_p9 = scmp.lt.u32.totalorder %s1502_s29, %s1498_s21  ;;  %p1506_p12 = scmp.lt.u32.totalorder %s1498_s21, %s1769_s18 }
 0x31a   : > { %p1500_p5 = pnand %p1499_p13, %p1832_p1 }
 0x31b   : > { %p1505_p10 = por %p1504_p9, %p1503_p6 }
 0x31c   : > { %p1501_p0 = pneg %p1500_p5 }
 0x31d   : > { %p1507_p2 = por %p1506_p12, %p1505_p10 }
 0x31f   : > { %p1508_p3 = pnand %p1507_p2, %p1501_p0 }
 0x321   : > { %1511 = shalt.err (!%p1508_p3)
}
 0x322   : > { %1371 = dma.vmem_to_hbm [thread:$0]  (%p1832_p1), %s1771_s10, 16, %s1769_s18, %s1103_s14  }
 0x323 PF: > { %p1388_p4 = scmp.ge.s32.totalorder %s1554_s27, 2  ;;  %s1127_s15 = sand.u32 1, %s1542_s24  }
 0x324   : > { %p1833_p7 = scmp.ne.s32.totalorder %s1824_s12, 0  ;;  %s1128_s19 = scalar_lea.sflag [#allocation4], %s1127_s15 }
 0x326   : > { %p1381_p8 = pnand %p1388_p4, %p1833_p7 }
 0x328   : > { %1537 = dma.done.wait (!%p1381_p8), %s1128_s19, 16  }
 0x329   : > { %1539 = vsyncadd (!%p1381_p8), %s1128_s19, 4294967280  ;;  %s1834_s16 = sld [smem:[#allocation11_spill]]  ;;  %p19_p11 = scmp.ge.s32.totalorder %s1629_s30, 4  }
 0x32a   : > { %s1835_s24 = smov %s1546_s25  ;;  %s1836_s25 = smov %s1550_s26 }
 0x32b   : > { %s1838_s27 = smov %s1629_s30  ;;  %21 = sbr.rel (!%p19_p11) target bundleno = 5 (0x5), region = 92 }
 0x32f   : > { %s1837_s26 = smov %s1834_s16 }
 0x332   :  { %1132 = vsyncpa [#allocation3], 1 }
 0x333   :  { %1134 = vsyncpa [#allocation3 + $0x1], 1 }
 0x334   :  { %1135 = vsyncpa [#allocation6], 1 }
 0x335   :  { %1136 = vsyncpa [#allocation4], 1 }
 0x336   :  { %1138 = vsyncpa [#allocation4 + $0x1], 1 }

</bundles_post_ra>
